<compile_context>
chip_gen: v7x
topology: tpu7x:2x2x1
jax: 0.10.0
libtpu: 0.0.40
codegen_flags: <defaults>
</compile_context>

<pallas_src>
import jax
import jax.numpy as jnp
from jax import lax
from jax.experimental import pallas as pl
from jax.experimental.pallas import tpu as pltpu

EPS = 1e-5


# ---------- pass 1: depthwise conv -> BN1 partial stats (per batch block) ----------
def _stats1_kernel(x_ref, w1_ref, s1_ref):
    # x_ref: (32, L), w1_ref: (32, 3), s1_ref: (32, 2) = [sum | sumsq]
    Lo = x_ref.shape[1] - 2
    w1 = w1_ref[...]
    x0 = x_ref[:, pl.ds(0, Lo)]
    x1 = x_ref[:, pl.ds(1, Lo)]
    x2 = x_ref[:, pl.ds(2, Lo)]
    h1 = x0 * w1[:, 0:1] + x1 * w1[:, 1:2] + x2 * w1[:, 2:3]      # (32, Lo)
    s = jnp.sum(h1, axis=1, keepdims=True)
    sq = jnp.sum(h1 * h1, axis=1, keepdims=True)
    s1_ref[...] = jnp.concatenate([s, sq], axis=1)


# ---------- pass 2: conv1 -> folded BN1 -> SiLU -> conv2 -> SiLU -> z; BN2 stats ----
def _mid_kernel(x_ref, pdw_ref, p2_ref, p34_ref, z_ref, s2_ref):
    # x_ref: (32, L)
    # pdw_ref: (32, 5) = [tap0 tap1 tap2 | a1 | c1]
    # p2_ref:  (8, 33) = [w2 (8x32) | b2]
    # p34_ref: (16, 9) = [w43 (16x8) | b43]
    # z_ref:   (8, Lo)    s2_ref: (16, 2) = [sum | sumsq] of h2
    Lo = z_ref.shape[1]
    pdw = pdw_ref[...]
    x0 = x_ref[:, pl.ds(0, Lo)]
    x1 = x_ref[:, pl.ds(1, Lo)]
    x2 = x_ref[:, pl.ds(2, Lo)]
    h1 = x0 * pdw[:, 0:1] + x1 * pdw[:, 1:2] + x2 * pdw[:, 2:3]   # depthwise conv
    h1 = h1 * pdw[:, 3:4] + pdw[:, 4:5]                           # folded BN1 affine
    h1 = h1 * jax.nn.sigmoid(h1)                                  # SiLU

    p2 = p2_ref[...]
    z = jnp.dot(p2[:, 0:32], h1, preferred_element_type=jnp.float32) + p2[:, 32:33]
    z = z * jax.nn.sigmoid(z)                                     # (8, Lo)
    z_ref[...] = z

    p34 = p34_ref[...]
    h2 = jnp.dot(p34[:, 0:8], z, preferred_element_type=jnp.float32) + p34[:, 8:9]
    s = jnp.sum(h2, axis=1, keepdims=True)
    sq = jnp.sum(h2 * h2, axis=1, keepdims=True)
    s2_ref[...] = jnp.concatenate([s, sq], axis=1)


# ---------- pass 3: folded conv3/conv4/BN2 applied to z -> output ----------
def _out_kernel(z_ref, pf_ref, o_ref):
    # z_ref: (8, Lo), pf_ref: (16, 9) = [wf (16x8) | bf], o_ref: (16, Lo)
    pf = pf_ref[...]
    o = jnp.dot(pf[:, 0:8], z_ref[...],
                preferred_element_type=jnp.float32) + pf[:, 8:9]
    o_ref[...] = o.astype(o_ref.dtype)


def depsep_block(x, p):
    """x: (N, 32, L) float32 (NCL) -> (N, 16, L-2) float32 (NCL)."""
    N, C, L = x.shape
    assert C == 32 and L >= 3
    Lo = L - 2
    cnt = jnp.float32(N * Lo)

    params = pltpu.CompilerParams(dimension_semantics=("parallel",))

    def param_spec(shape):  # small 2-D parameter, same block every grid step
        return pl.BlockSpec(tuple(shape), lambda n: (0, 0))

    x_spec = pl.BlockSpec((None, 32, L), lambda n: (n, 0, 0))
    z_spec = pl.BlockSpec((None, 8, Lo), lambda n: (n, 0, 0))

    w1 = p['w1']                                                   # (32, 3)

    # ---------------- pass 1: BN1 statistics ----------------
    stats1 = pl.pallas_call(
        _stats1_kernel,
        grid=(N,),
        in_specs=[x_spec, param_spec(w1.shape)],
        out_specs=pl.BlockSpec((None, 32, 2), lambda n: (n, 0, 0)),
        out_shape=jax.ShapeDtypeStruct((N, 32, 2), jnp.float32),
        compiler_params=params,
    )(x, w1)
    s1 = jnp.sum(stats1, axis=0)                                   # (32, 2)
    mean1 = s1[:, 0] / cnt
    var1 = s1[:, 1] / cnt - mean1 * mean1                          # biased var (train BN)
    a1 = p['g1'] * lax.rsqrt(var1 + EPS)
    c1 = p['be1'] - mean1 * a1

    # fuse conv3 -> conv4
    w43 = p['w4'] @ p['w3']                                        # (16, 8)
    b43 = p['w4'] @ p['b3']                                        # (16,)

    pdw = jnp.concatenate([w1, a1[:, None], c1[:, None]], axis=1)  # (32, 5)
    p2 = jnp.concatenate([p['w2'], p['b2'][:, None]], axis=1)      # (8, 33)
    p34 = jnp.concatenate([w43, b43[:, None]], axis=1)             # (16, 9)

    # ---------------- pass 2: z + BN2 statistics ----------------
    z, stats2 = pl.pallas_call(
        _mid_kernel,
        grid=(N,),
        in_specs=[x_spec, param_spec(pdw.shape), param_spec(p2.shape),
                  param_spec(p34.shape)],
        out_specs=(z_spec,
                   pl.BlockSpec((None, 16, 2), lambda n: (n, 0, 0))),
        out_shape=(jax.ShapeDtypeStruct((N, 8, Lo), jnp.float32),
                   jax.ShapeDtypeStruct((N, 16, 2), jnp.float32)),
        compiler_params=params,
    )(x, pdw, p2, p34)
    s2 = jnp.sum(stats2, axis=0)                                   # (16, 2)
    mean2 = s2[:, 0] / cnt
    var2 = s2[:, 1] / cnt - mean2 * mean2
    a2 = p['g2'] * lax.rsqrt(var2 + EPS)
    c2 = p['be2'] - mean2 * a2
    wf = a2[:, None] * w43                                         # (16, 8)
    bf = a2 * b43 + c2                                             # (16,)
    pf = jnp.concatenate([wf, bf[:, None]], axis=1)                # (16, 9)

    # ---------------- pass 3: folded conv34 + BN2 ----------------
    out = pl.pallas_call(
        _out_kernel,
        grid=(N,),
        in_specs=[z_spec, param_spec(pf.shape)],
        out_specs=pl.BlockSpec((None, 16, Lo), lambda n: (n, 0, 0)),
        out_shape=jax.ShapeDtypeStruct((N, 16, Lo), jnp.float32),
        compiler_params=params,
    )(z, pf)
    return out


def init_params(key):
    ks = jax.random.split(key, 6)
    return dict(
        # conv1.weight (32,1,3) stored as (32,3)
        w1=jax.random.normal(ks[0], (32, 3), jnp.float32) * 0.3,
        g1=jnp.ones((32,), jnp.float32),
        be1=jnp.zeros((32,), jnp.float32),
        # conv2.weight (8,32,1) -> (8,32), bias (8,)
        w2=jax.random.normal(ks[1], (8, 32), jnp.float32) * 0.2,
        b2=jax.random.normal(ks[2], (8,), jnp.float32) * 0.1,
        # conv3.weight (32,8,1) -> (32,8), bias (32,)
        w3=jax.random.normal(ks[3], (32, 8), jnp.float32) * 0.2,
        b3=jax.random.normal(ks[4], (32,), jnp.float32) * 0.1,
        # conv4.weight (16,32,1) -> (16,32), no bias
        w4=jax.random.normal(ks[5], (16, 32), jnp.float32) * 0.2,
        g2=jnp.ones((16,), jnp.float32),
        be2=jnp.zeros((16,), jnp.float32),
    )


def _reference(x, p):
    """Pure-JAX mirror of the PyTorch forward (NCL), two-pass variance."""
    Lo = x.shape[2] - 2
    w1 = p['w1']
    h = (x[:, :, 0:Lo] * w1[None, :, 0:1]
         + x[:, :, 1:Lo + 1] * w1[None, :, 1:2]
         + x[:, :, 2:Lo + 2] * w1[None, :, 2:3])                   # (N,32,Lo)
    m = h.mean(axis=(0, 2), keepdims=True)
    v = ((h - m) ** 2).mean(axis=(0, 2), keepdims=True)
    h = (h - m) / jnp.sqrt(v + EPS) * p['g1'][None, :, None] + p['be1'][None, :, None]
    h = h * jax.nn.sigmoid(h)
    h = jnp.einsum('oc,ncl->nol', p['w2'], h) + p['b2'][None, :, None]
    h = h * jax.nn.sigmoid(h)
    h = jnp.einsum('oc,ncl->nol', p['w3'], h) + p['b3'][None, :, None]
    h = jnp.einsum('oc,ncl->nol', p['w4'], h)
    m = h.mean(axis=(0, 2), keepdims=True)
    v = ((h - m) ** 2).mean(axis=(0, 2), keepdims=True)
    h = (h - m) / jnp.sqrt(v + EPS) * p['g2'][None, :, None] + p['be2'][None, :, None]
    return h


if __name__ == "__main__":
    key = jax.random.PRNGKey(0)
    kx, kp = jax.random.split(key)
    # Module fixes in_channels=32; pick batch=2, length=16 (NCL).
    x = jax.random.normal(kx, (2, 32, 16), jnp.float32)
    params = init_params(kp)

    out = jax.block_until_ready(jax.jit(depsep_block)(x, params))
    assert out.shape == (2, 16, 14), out.shape

    ref = jax.block_until_ready(_reference(x, params))
    assert jnp.allclose(out, ref, rtol=2e-3, atol=2e-3), \
        float(jnp.max(jnp.abs(out - ref)))

    print("KERNEL_OK")
</pallas_src>

<mosaic_0001>
module attributes {stable_mosaic.version = 11 : i64} {
  func.func @_stats1_kernel(%arg0: i32, %arg1: memref<1x32x16xf32, #tpu.memory_space<vmem>>, %arg2: memref<32x3xf32, #tpu.memory_space<vmem>>, %arg3: memref<1x32x2xf32, #tpu.memory_space<vmem>>) attributes {dimension_semantics = [#tpu.dimension_semantics<parallel>], iteration_bounds = array<i64: 2>, scalar_prefetch = 0 : i64, scratch_operands = 0 : i64, tpu.core_type = #tpu.core_type<tc>, window_params = [{transform_indices = @transform_0, window_bounds = array<i64: 1, 32, 16>}, {pipeline_mode = #tpu.pipeline_mode<synchronous>, transform_indices = @transform_1, window_bounds = array<i64: 32, 3>}, {transform_indices = @transform_2, window_bounds = array<i64: 1, 32, 2>}]} {
    %c0 = arith.constant 0 : index
    %c0_0 = arith.constant 0 : index
    %0 = vector.load %arg2[%c0, %c0_0] : memref<32x3xf32, #tpu.memory_space<vmem>>, vector<32x3xf32>
    %c0_1 = arith.constant 0 : index
    %c0_2 = arith.constant 0 : index
    %c0_3 = arith.constant 0 : index
    %1 = vector.load %arg1[%c0_1, %c0_2, %c0_3] : memref<1x32x16xf32, #tpu.memory_space<vmem>>, vector<1x32x14xf32>
    %2 = vector.shape_cast %1 : vector<1x32x14xf32> to vector<32x14xf32>
    %c0_4 = arith.constant 0 : index
    %c0_5 = arith.constant 0 : index
    %c1 = arith.constant 1 : index
    %3 = vector.load %arg1[%c0_4, %c0_5, %c1] : memref<1x32x16xf32, #tpu.memory_space<vmem>>, vector<1x32x14xf32>
    %4 = vector.shape_cast %3 : vector<1x32x14xf32> to vector<32x14xf32>
    %c0_6 = arith.constant 0 : index
    %c0_7 = arith.constant 0 : index
    %c2 = arith.constant 2 : index
    %5 = vector.load %arg1[%c0_6, %c0_7, %c2] : memref<1x32x16xf32, #tpu.memory_space<vmem>>, vector<1x32x14xf32>
    %6 = vector.shape_cast %5 : vector<1x32x14xf32> to vector<32x14xf32>
    %7 = vector.extract_strided_slice %0 {offsets = [0, 0], sizes = [32, 1], strides = [1, 1]} : vector<32x3xf32> to vector<32x1xf32>
    %8 = vector.broadcast %7 : vector<32x1xf32> to vector<32x14xf32>
    %9 = arith.mulf %2, %8 : vector<32x14xf32>
    %10 = vector.extract_strided_slice %0 {offsets = [0, 1], sizes = [32, 1], strides = [1, 1]} : vector<32x3xf32> to vector<32x1xf32>
    %11 = vector.broadcast %10 : vector<32x1xf32> to vector<32x14xf32>
    %12 = arith.mulf %4, %11 : vector<32x14xf32>
    %13 = arith.addf %9, %12 : vector<32x14xf32>
    %14 = vector.extract_strided_slice %0 {offsets = [0, 2], sizes = [32, 1], strides = [1, 1]} : vector<32x3xf32> to vector<32x1xf32>
    %15 = vector.broadcast %14 : vector<32x1xf32> to vector<32x14xf32>
    %16 = arith.mulf %6, %15 : vector<32x14xf32>
    %17 = arith.addf %13, %16 : vector<32x14xf32>
    %cst = arith.constant dense<0.000000e+00> : vector<32xf32>
    %18 = vector.multi_reduction <add>, %17, %cst [1] : vector<32x14xf32> to vector<32xf32>
    %19 = vector.shape_cast %18 : vector<32xf32> to vector<32x1xf32>
    %20 = arith.mulf %17, %17 : vector<32x14xf32>
    %cst_8 = arith.constant dense<0.000000e+00> : vector<32xf32>
    %21 = vector.multi_reduction <add>, %20, %cst_8 [1] : vector<32x14xf32> to vector<32xf32>
    %22 = vector.shape_cast %21 : vector<32xf32> to vector<32x1xf32>
    %23 = tpu.concatenate %19, %22 in 1 : vector<32x1xf32>, vector<32x1xf32> -> vector<32x2xf32>
    %c0_9 = arith.constant 0 : index
    %c0_10 = arith.constant 0 : index
    %c0_11 = arith.constant 0 : index
    %24 = vector.load %arg3[%c0_9, %c0_10, %c0_11] : memref<1x32x2xf32, #tpu.memory_space<vmem>>, vector<1x32x2xf32>
    %25 = vector.shape_cast %24 : vector<1x32x2xf32> to vector<32x2xf32>
    %26 = vector.shape_cast %23 : vector<32x2xf32> to vector<1x32x2xf32>
    tpu.vector_store %arg3[%c0_9, %c0_10, %c0_11], %26 {strides = array<i32>} : memref<1x32x2xf32, #tpu.memory_space<vmem>>, vector<1x32x2xf32>,
    return
  }
  func.func @transform_0(%arg0: i32) -> (i32, i32, i32) {
    %c0_i32 = arith.constant 0 : i32
    %c0_i32_0 = arith.constant 0 : i32
    %c0_i32_1 = arith.constant 0 : i32
    return %arg0, %c0_i32, %c0_i32_0 : i32, i32, i32
  }
  func.func @transform_1(%arg0: i32) -> (i32, i32) {
    %c0_i32 = arith.constant 0 : i32
    %c0_i32_0 = arith.constant 0 : i32
    %c0_i32_1 = arith.constant 0 : i32
    return %c0_i32, %c0_i32_0 : i32, i32
  }
  func.func @transform_2(%arg0: i32) -> (i32, i32, i32) {
    %c0_i32 = arith.constant 0 : i32
    %c0_i32_0 = arith.constant 0 : i32
    %c0_i32_1 = arith.constant 0 : i32
    return %arg0, %c0_i32, %c0_i32_0 : i32, i32, i32
  }
}

module attributes {stable_mosaic.version = 11 : i64} {
  func.func @_mid_kernel(%arg0: i32, %arg1: memref<1x32x16xf32, #tpu.memory_space<vmem>>, %arg2: memref<32x5xf32, #tpu.memory_space<vmem>>, %arg3: memref<8x33xf32, #tpu.memory_space<vmem>>, %arg4: memref<16x9xf32, #tpu.memory_space<vmem>>, %arg5: memref<1x8x14xf32, #tpu.memory_space<vmem>>, %arg6: memref<1x16x2xf32, #tpu.memory_space<vmem>>) attributes {dimension_semantics = [#tpu.dimension_semantics<parallel>], iteration_bounds = array<i64: 2>, scalar_prefetch = 0 : i64, scratch_operands = 0 : i64, tpu.core_type = #tpu.core_type<tc>, window_params = [{transform_indices = @transform_0, window_bounds = array<i64: 1, 32, 16>}, {pipeline_mode = #tpu.pipeline_mode<synchronous>, transform_indices = @transform_1, window_bounds = array<i64: 32, 5>}, {pipeline_mode = #tpu.pipeline_mode<synchronous>, transform_indices = @transform_2, window_bounds = array<i64: 8, 33>}, {pipeline_mode = #tpu.pipeline_mode<synchronous>, transform_indices = @transform_3, window_bounds = array<i64: 16, 9>}, {transform_indices = @transform_4, window_bounds = array<i64: 1, 8, 14>}, {transform_indices = @transform_5, window_bounds = array<i64: 1, 16, 2>}]} {
    %c0 = arith.constant 0 : index
    %c0_0 = arith.constant 0 : index
    %0 = vector.load %arg2[%c0, %c0_0] : memref<32x5xf32, #tpu.memory_space<vmem>>, vector<32x5xf32>
    %c0_1 = arith.constant 0 : index
    %c0_2 = arith.constant 0 : index
    %c0_3 = arith.constant 0 : index
    %1 = vector.load %arg1[%c0_1, %c0_2, %c0_3] : memref<1x32x16xf32, #tpu.memory_space<vmem>>, vector<1x32x14xf32>
    %2 = vector.shape_cast %1 : vector<1x32x14xf32> to vector<32x14xf32>
    %c0_4 = arith.constant 0 : index
    %c0_5 = arith.constant 0 : index
    %c1 = arith.constant 1 : index
    %3 = vector.load %arg1[%c0_4, %c0_5, %c1] : memref<1x32x16xf32, #tpu.memory_space<vmem>>, vector<1x32x14xf32>
    %4 = vector.shape_cast %3 : vector<1x32x14xf32> to vector<32x14xf32>
    %c0_6 = arith.constant 0 : index
    %c0_7 = arith.constant 0 : index
    %c2 = arith.constant 2 : index
    %5 = vector.load %arg1[%c0_6, %c0_7, %c2] : memref<1x32x16xf32, #tpu.memory_space<vmem>>, vector<1x32x14xf32>
    %6 = vector.shape_cast %5 : vector<1x32x14xf32> to vector<32x14xf32>
    %7 = vector.extract_strided_slice %0 {offsets = [0, 0], sizes = [32, 1], strides = [1, 1]} : vector<32x5xf32> to vector<32x1xf32>
    %8 = vector.broadcast %7 : vector<32x1xf32> to vector<32x14xf32>
    %9 = arith.mulf %2, %8 : vector<32x14xf32>
    %10 = vector.extract_strided_slice %0 {offsets = [0, 1], sizes = [32, 1], strides = [1, 1]} : vector<32x5xf32> to vector<32x1xf32>
    %11 = vector.broadcast %10 : vector<32x1xf32> to vector<32x14xf32>
    %12 = arith.mulf %4, %11 : vector<32x14xf32>
    %13 = arith.addf %9, %12 : vector<32x14xf32>
    %14 = vector.extract_strided_slice %0 {offsets = [0, 2], sizes = [32, 1], strides = [1, 1]} : vector<32x5xf32> to vector<32x1xf32>
    %15 = vector.broadcast %14 : vector<32x1xf32> to vector<32x14xf32>
    %16 = arith.mulf %6, %15 : vector<32x14xf32>
    %17 = arith.addf %13, %16 : vector<32x14xf32>
    %18 = vector.extract_strided_slice %0 {offsets = [0, 3], sizes = [32, 1], strides = [1, 1]} : vector<32x5xf32> to vector<32x1xf32>
    %19 = vector.broadcast %18 : vector<32x1xf32> to vector<32x14xf32>
    %20 = arith.mulf %17, %19 : vector<32x14xf32>
    %21 = vector.extract_strided_slice %0 {offsets = [0, 4], sizes = [32, 1], strides = [1, 1]} : vector<32x5xf32> to vector<32x1xf32>
    %22 = vector.broadcast %21 : vector<32x1xf32> to vector<32x14xf32>
    %23 = arith.addf %20, %22 : vector<32x14xf32>
    %24 = arith.negf %23 : vector<32x14xf32>
    %25 = math.exp %24 : vector<32x14xf32>
    %cst = arith.constant 1.000000e+00 : f32
    %26 = vector.broadcast %cst : f32 to vector<32x14xf32>
    %27 = arith.addf %26, %25 : vector<32x14xf32>
    %28 = arith.divf %26, %27 : vector<32x14xf32>
    %29 = arith.mulf %23, %28 : vector<32x14xf32>
    %c0_8 = arith.constant 0 : index
    %c0_9 = arith.constant 0 : index
    %30 = vector.load %arg3[%c0_8, %c0_9] : memref<8x33xf32, #tpu.memory_space<vmem>>, vector<8x33xf32>
    %31 = vector.extract_strided_slice %30 {offsets = [0, 0], sizes = [8, 32], strides = [1, 1]} : vector<8x33xf32> to vector<8x32xf32>
    %cst_10 = arith.constant dense<0.000000e+00> : vector<8x14xf32>
    %32 = tpu.matmul %31, %29, %cst_10 {dimension_numbers = #tpu.dot_dimension_numbers<[1], [0], [0], [1], [0, 0, 1, 1], [], []>} : vector<8x32xf32>, vector<32x14xf32>, vector<8x14xf32> -> vector<8x14xf32>
    %33 = vector.extract_strided_slice %30 {offsets = [0, 32], sizes = [8, 1], strides = [1, 1]} : vector<8x33xf32> to vector<8x1xf32>
    %34 = vector.broadcast %33 : vector<8x1xf32> to vector<8x14xf32>
    %35 = arith.addf %32, %34 : vector<8x14xf32>
    %36 = arith.negf %35 : vector<8x14xf32>
    %37 = math.exp %36 : vector<8x14xf32>
    %cst_11 = arith.constant 1.000000e+00 : f32
    %38 = vector.broadcast %cst_11 : f32 to vector<8x14xf32>
    %39 = arith.addf %38, %37 : vector<8x14xf32>
    %40 = arith.divf %38, %39 : vector<8x14xf32>
    %41 = arith.mulf %35, %40 : vector<8x14xf32>
    %c0_12 = arith.constant 0 : index
    %c0_13 = arith.constant 0 : index
    %c0_14 = arith.constant 0 : index
    %42 = vector.load %arg5[%c0_12, %c0_13, %c0_14] : memref<1x8x14xf32, #tpu.memory_space<vmem>>, vector<1x8x14xf32>
    %43 = vector.shape_cast %42 : vector<1x8x14xf32> to vector<8x14xf32>
    %44 = vector.shape_cast %41 : vector<8x14xf32> to vector<1x8x14xf32>
    tpu.vector_store %arg5[%c0_12, %c0_13, %c0_14], %44 {strides = array<i32>} : memref<1x8x14xf32, #tpu.memory_space<vmem>>, vector<1x8x14xf32>,
    %c0_15 = arith.constant 0 : index
    %c0_16 = arith.constant 0 : index
    %45 = vector.load %arg4[%c0_15, %c0_16] : memref<16x9xf32, #tpu.memory_space<vmem>>, vector<16x9xf32>
    %46 = vector.extract_strided_slice %45 {offsets = [0, 0], sizes = [16, 8], strides = [1, 1]} : vector<16x9xf32> to vector<16x8xf32>
    %cst_17 = arith.constant dense<0.000000e+00> : vector<16x14xf32>
    %47 = tpu.matmul %46, %41, %cst_17 {dimension_numbers = #tpu.dot_dimension_numbers<[1], [0], [0], [1], [0, 0, 1, 1], [], []>} : vector<16x8xf32>, vector<8x14xf32>, vector<16x14xf32> -> vector<16x14xf32>
    %48 = vector.extract_strided_slice %45 {offsets = [0, 8], sizes = [16, 1], strides = [1, 1]} : vector<16x9xf32> to vector<16x1xf32>
    %49 = vector.broadcast %48 : vector<16x1xf32> to vector<16x14xf32>
    %50 = arith.addf %47, %49 : vector<16x14xf32>
    %cst_18 = arith.constant dense<0.000000e+00> : vector<16xf32>
    %51 = vector.multi_reduction <add>, %50, %cst_18 [1] : vector<16x14xf32> to vector<16xf32>
    %52 = vector.shape_cast %51 : vector<16xf32> to vector<16x1xf32>
    %53 = arith.mulf %50, %50 : vector<16x14xf32>
    %cst_19 = arith.constant dense<0.000000e+00> : vector<16xf32>
    %54 = vector.multi_reduction <add>, %53, %cst_19 [1] : vector<16x14xf32> to vector<16xf32>
    %55 = vector.shape_cast %54 : vector<16xf32> to vector<16x1xf32>
    %56 = tpu.concatenate %52, %55 in 1 : vector<16x1xf32>, vector<16x1xf32> -> vector<16x2xf32>
    %c0_20 = arith.constant 0 : index
    %c0_21 = arith.constant 0 : index
    %c0_22 = arith.constant 0 : index
    %57 = vector.load %arg6[%c0_20, %c0_21, %c0_22] : memref<1x16x2xf32, #tpu.memory_space<vmem>>, vector<1x16x2xf32>
    %58 = vector.shape_cast %57 : vector<1x16x2xf32> to vector<16x2xf32>
    %59 = vector.shape_cast %56 : vector<16x2xf32> to vector<1x16x2xf32>
    tpu.vector_store %arg6[%c0_20, %c0_21, %c0_22], %59 {strides = array<i32>} : memref<1x16x2xf32, #tpu.memory_space<vmem>>, vector<1x16x2xf32>,
    return
  }
  func.func @transform_0(%arg0: i32) -> (i32, i32, i32) {
    %c0_i32 = arith.constant 0 : i32
    %c0_i32_0 = arith.constant 0 : i32
    %c0_i32_1 = arith.constant 0 : i32
    return %arg0, %c0_i32, %c0_i32_0 : i32, i32, i32
  }
  func.func @transform_1(%arg0: i32) -> (i32, i32) {
    %c0_i32 = arith.constant 0 : i32
    %c0_i32_0 = arith.constant 0 : i32
    %c0_i32_1 = arith.constant 0 : i32
    return %c0_i32, %c0_i32_0 : i32, i32
  }
  func.func @transform_2(%arg0: i32) -> (i32, i32) {
    %c0_i32 = arith.constant 0 : i32
    %c0_i32_0 = arith.constant 0 : i32
    %c0_i32_1 = arith.constant 0 : i32
    return %c0_i32, %c0_i32_0 : i32, i32
  }
  func.func @transform_3(%arg0: i32) -> (i32, i32) {
    %c0_i32 = arith.constant 0 : i32
    %c0_i32_0 = arith.constant 0 : i32
    %c0_i32_1 = arith.constant 0 : i32
    return %c0_i32, %c0_i32_0 : i32, i32
  }
  func.func @transform_4(%arg0: i32) -> (i32, i32, i32) {
    %c0_i32 = arith.constant 0 : i32
    %c0_i32_0 = arith.constant 0 : i32
    %c0_i32_1 = arith.constant 0 : i32
    return %arg0, %c0_i32, %c0_i32_0 : i32, i32, i32
  }
  func.func @transform_5(%arg0: i32) -> (i32, i32, i32) {
    %c0_i32 = arith.constant 0 : i32
    %c0_i32_0 = arith.constant 0 : i32
    %c0_i32_1 = arith.constant 0 : i32
    return %arg0, %c0_i32, %c0_i32_0 : i32, i32, i32
  }
}

module attributes {stable_mosaic.version = 11 : i64} {
  func.func @_out_kernel(%arg0: i32, %arg1: memref<1x8x14xf32, #tpu.memory_space<vmem>>, %arg2: memref<16x9xf32, #tpu.memory_space<vmem>>, %arg3: memref<1x16x14xf32, #tpu.memory_space<vmem>>) attributes {dimension_semantics = [#tpu.dimension_semantics<parallel>], iteration_bounds = array<i64: 2>, scalar_prefetch = 0 : i64, scratch_operands = 0 : i64, tpu.core_type = #tpu.core_type<tc>, window_params = [{transform_indices = @transform_0, window_bounds = array<i64: 1, 8, 14>}, {pipeline_mode = #tpu.pipeline_mode<synchronous>, transform_indices = @transform_1, window_bounds = array<i64: 16, 9>}, {transform_indices = @transform_2, window_bounds = array<i64: 1, 16, 14>}]} {
    %c0 = arith.constant 0 : index
    %c0_0 = arith.constant 0 : index
    %0 = vector.load %arg2[%c0, %c0_0] : memref<16x9xf32, #tpu.memory_space<vmem>>, vector<16x9xf32>
    %1 = vector.extract_strided_slice %0 {offsets = [0, 0], sizes = [16, 8], strides = [1, 1]} : vector<16x9xf32> to vector<16x8xf32>
    %c0_1 = arith.constant 0 : index
    %c0_2 = arith.constant 0 : index
    %c0_3 = arith.constant 0 : index
    %2 = vector.load %arg1[%c0_1, %c0_2, %c0_3] : memref<1x8x14xf32, #tpu.memory_space<vmem>>, vector<1x8x14xf32>
    %3 = vector.shape_cast %2 : vector<1x8x14xf32> to vector<8x14xf32>
    %cst = arith.constant dense<0.000000e+00> : vector<16x14xf32>
    %4 = tpu.matmul %1, %3, %cst {dimension_numbers = #tpu.dot_dimension_numbers<[1], [0], [0], [1], [0, 0, 1, 1], [], []>} : vector<16x8xf32>, vector<8x14xf32>, vector<16x14xf32> -> vector<16x14xf32>
    %5 = vector.extract_strided_slice %0 {offsets = [0, 8], sizes = [16, 1], strides = [1, 1]} : vector<16x9xf32> to vector<16x1xf32>
    %6 = vector.broadcast %5 : vector<16x1xf32> to vector<16x14xf32>
    %7 = arith.addf %4, %6 : vector<16x14xf32>
    %c0_4 = arith.constant 0 : index
    %c0_5 = arith.constant 0 : index
    %c0_6 = arith.constant 0 : index
    %8 = vector.load %arg3[%c0_4, %c0_5, %c0_6] : memref<1x16x14xf32, #tpu.memory_space<vmem>>, vector<1x16x14xf32>
    %9 = vector.shape_cast %8 : vector<1x16x14xf32> to vector<16x14xf32>
    %10 = vector.shape_cast %7 : vector<16x14xf32> to vector<1x16x14xf32>
    tpu.vector_store %arg3[%c0_4, %c0_5, %c0_6], %10 {strides = array<i32>} : memref<1x16x14xf32, #tpu.memory_space<vmem>>, vector<1x16x14xf32>,
    return
  }
  func.func @transform_0(%arg0: i32) -> (i32, i32, i32) {
    %c0_i32 = arith.constant 0 : i32
    %c0_i32_0 = arith.constant 0 : i32
    %c0_i32_1 = arith.constant 0 : i32
    return %arg0, %c0_i32, %c0_i32_0 : i32, i32, i32
  }
  func.func @transform_1(%arg0: i32) -> (i32, i32) {
    %c0_i32 = arith.constant 0 : i32
    %c0_i32_0 = arith.constant 0 : i32
    %c0_i32_1 = arith.constant 0 : i32
    return %c0_i32, %c0_i32_0 : i32, i32
  }
  func.func @transform_2(%arg0: i32) -> (i32, i32, i32) {
    %c0_i32 = arith.constant 0 : i32
    %c0_i32_0 = arith.constant 0 : i32
    %c0_i32_1 = arith.constant 0 : i32
    return %arg0, %c0_i32, %c0_i32_0 : i32, i32, i32
  }
}

</mosaic_0001>

<bundles_post_ra>
// kernel: depsep_block.5
= control target key start
LH: loop header
LB: loop body
LE: loop exit
PB: predicated region body
PF: predicated region fallthrough
CT: control target
= control target key end

     0   :  { %s347_s9 = smov 0   ;;  %s370_s0 = inlined_call_operand.vmem [shape: f32[2,8,14], index: 0, kind: input, shape index: {}]   ;;  %s371_s1 = inlined_call_operand.vmem [shape: f32[16,9], index: 1, kind: input, shape index: {}]   ;;  %s372_s2 = inlined_call_operand.vmem [shape: f32[2,16,14], index: 2, kind: output, shape index: {}]  }
   0x1 LB: > { %s292_s10 = sadd.s32 4294967295, %s329_s9   ;;  %p296_p0 = scmp.ge.s32.totalorder %s329_s9, 1  ;;  %s329_s9 = sphi %s347_s9, %s12_s9  }
   0x2   : > { %p111_p1 = scmp.lt.s32.totalorder %s329_s9, 3 }
   0x4   : > { %p112_p2 = pnand %p296_p0, %p111_p1 }
   0x5   : > { %p132_p3 = scmp.lt.s32.totalorder (!%p112_p2), %s292_s10, 1  ;;  %v141_v0 = vld [vmem:[%s371_s1] sm:$0xff] (!%p112_p2)  ;;  %vm154_vm0 = vcmask (!%p112_p2), 64512   ;;  %v331_v1 = vmov (!%p112_p2), 8   ;;  %v142_v2 = vld [vmem:[%s371_s1 + $0x8] sm:$0xff] (!%p112_p2)  ;;  %vm234_vm1 = vcmask (!%p112_p2), 113664  }
   0x6   : > { %115 = sbr.rel (%p112_p2) target bundleno = 235 (0xeb), region = 28  ;;  %310 = vmatprep.mubr.msk.f32.mxu0 (!%p112_p2), %vm154_vm0, %v141_v0  ;;  %322 = vset.pattern.permute.xlu0 (!%p112_p2), %v331_v1 }
   0x7   : > { %146 = vperm.xlu0 (!%p112_p2), %322, %v141_v0  }
   0xb   : > { %151 = vperm.xlu0 (!%p112_p2), %322, %v142_v2  }
   0xd   : > { %s374_s10 = smov (!%p132_p3, %s292_s10), 1 }
   0xe   : > { %s297_s13 = sshll.u32 %s374_s10, 3  ;;  %s304_s19 = sshll.u32 %s374_s10, 4 }
   0xf   : > { %s135_s16 = scalar_lea.vmem %s370_s0, %s297_s13  ;;  %s140_s22 = scalar_lea.vmem %s372_s2, %s304_s19 }
  0x10   : > { %v143_v3 = vld [vmem:[%s135_s16] sm:$0xff] }
  0x11   : > { %308 = vmatprep.subr.mxu0 %v143_v3 }
  0x12   : > { %309 = vmatpush3.msra.mxu0 %v143_v3 }
  0x13   : > { %311 = vmatmul.mubr.msk.f32.vlgmr.msra.gmra.mrb[0].mxu0 %vm154_vm0, %v142_v2 }
  0x86   : > { %v147_v4 = vpop.permute.xlu0 %146 }
  0x8a   : > { %v152_v5 = vpop.permute.xlu0 %151 }
  0xe6   : > { %v312_v6 = vpop.f32.mrb[0].mxu0 }
  0xe7   : > { %v231_v7 = vadd.f32 %v312_v6, %v152_v5  ;;  %v225_v8 = vpop.f32.mrb[1].mxu0 }
  0xe8   : > { %v226_v9 = vadd.f32 %v225_v8, %v147_v4 }
  0xe9   : > { %236 = vst.msk [vmem:[%s140_s22 + $0x8] sm:$0xff] %vm234_vm1, %v231_v7 }
  0xea   : > { %235 = vst.msk [vmem:[%s140_s22] sm:$0xff] %vm234_vm1, %v226_v9 }
  0xeb PF: > { %s12_s9 = sadd.s32 1, %s329_s9  }
  0xec   : > { %p9_p4 = scmp.ge.s32.totalorder %s12_s9, 4  }
  0xee   :  { %11 = sbr.rel (!%p9_p4) target bundleno = 1 (0x1), region = 58 }

// kernel: depsep_block.3
= control target key start
LH: loop header
LB: loop body
LE: loop exit
PB: predicated region body
PF: predicated region fallthrough
CT: control target
= control target key end

     0   :  { %s411_s9 = smov 0   ;;  %s459_s0 = inlined_call_operand.vmem [shape: f32[2,32,16], index: 0, kind: input, shape index: {}]   ;;  %s460_s1 = inlined_call_operand.vmem [shape: f32[32,3], index: 1, kind: input, shape index: {}]   ;;  %s461_s2 = inlined_call_operand.vmem [shape: f32[2,32,2], index: 2, kind: output, shape index: {}]  }
   0x1 LB: > { %s350_s10 = sadd.s32 4294967295, %s389_s9   ;;  %p354_p0 = scmp.ge.s32.totalorder %s389_s9, 1  ;;  %s389_s9 = sphi %s411_s9, %s12_s9  }
   0x2   : > { %p112_p1 = scmp.lt.s32.totalorder %s389_s9, 3 }
   0x4   : > { %p113_p2 = pnand %p354_p0, %p112_p1 }
   0x5   : > { %v146_v0 = vld [vmem:[%s460_s1 + $0x10] sm:$0xff] (!%p113_p2)  ;;  %v144_v1 = vld [vmem:[%s460_s1] sm:$0xff] (!%p113_p2)  ;;  %v391_v2 = vmov (!%p113_p2), 1   ;;  %v147_v3 = vld [vmem:[%s460_s1 + $0x18] sm:$0xff] (!%p113_p2)  ;;  %v392_v5 = vmov (!%p113_p2), 2   ;;  %v393_v6 = vmov (!%p113_p2), 0  }
   0x6   : > { %116 = sbr.rel (%p113_p2) target bundleno = 424 (0x1a8), region = 28  ;;  %377 = vset.pattern.permute.xlu1 (!%p113_p2), %v391_v2  ;;  %376 = vset.pattern.permute.xlu0 (!%p113_p2), %v391_v2  ;;  %v145_v4 = vld [vmem:[%s460_s1 + $0x8] sm:$0xff] (!%p113_p2)  ;;  %p134_p3 = scmp.lt.s32.totalorder (!%p113_p2), %s350_s10, 1  ;;  %vm256_vm0 = vcmask (!%p113_p2), 113664   ;;  %vm285_vm1 = vcmask (!%p113_p2), 7168   ;;  %vm290_vm2 = vcmask (!%p113_p2), 15360  }
   0x7   : > { %185 = vperm.xlu1 (!%p113_p2), %377, %v146_v0   ;;  %177 = vperm.xlu0 (!%p113_p2), %376, %v144_v1   ;;  %s394_s23 = smov (!%p113_p2), 127   ;;  %s395_s24 = smov (!%p113_p2), 126  }
   0xb   : > { %189 = vperm.xlu1 (!%p113_p2), %377, %v147_v3   ;;  %181 = vperm.xlu0 (!%p113_p2), %376, %v145_v4  }
   0xd   : > { %s463_s10 = smov (!%p134_p3, %s350_s10), 1 }
   0xe   : > { %s361_s19 = sshll.u32 %s463_s10, 5 }
   0xf   : > { %379 = vset.pattern.permute.xlu1 %v392_v5  ;;  %378 = vset.pattern.permute.xlu0 %v392_v5  ;;  %s138_s22 = scalar_lea.vmem %s459_s0, %s361_s19  ;;  %s143_s27 = scalar_lea.vmem %s461_s2, %s361_s19 }
  0x10   : > { %221 = vperm.xlu1 %379, %v145_v4   ;;  %217 = vperm.xlu0 %378, %v144_v1   ;;  %v148_v7 = vld [vmem:[%s138_s22] sm:$0xff]  ;;  %v150_v11 = vld [vmem:[%s138_s22 + $0x10] sm:$0xff]  ;;  %v149_v12 = vld [vmem:[%s138_s22 + $0x8] sm:$0xff] }
  0x11   : > { %v151_v17 = vld [vmem:[%s138_s22 + $0x18] sm:$0xff] }
  0x14   : > { %225 = vperm.xlu1 %379, %v146_v0   ;;  %229 = vperm.xlu0 %378, %v147_v3  }
  0x18   : > { %380 = vset.pattern.permute.xlu1 %v393_v6  ;;  %381 = vset.pattern.permute.xlu0 %v393_v6 }
  0x19   : > { %154 = vperm.xlu1 %380, %v144_v1   ;;  %159 = vperm.xlu0 %381, %v145_v4  }
  0x1d   : > { %164 = vperm.xlu1 %380, %v146_v0   ;;  %382 = vset.pattern.permute.xlu0 %v392_v5 }
  0x21   : > { %169 = vperm.xlu1 %380, %v147_v3  }
  0x86   : > { %v186_v8 = vpop.permute.xlu1 %185  ;;  %v178_v9 = vpop.permute.xlu0 %177 }
  0x87   : > { %v192_v10 = vmul.f32 %v178_v9, %v148_v7  ;;  %v194_v15 = vmul.f32 %v186_v8, %v150_v11 }
  0x89   : > { %200 = vrot.lane.b32.xlu0 %v192_v10, %s394_s23 }
  0x8a   : > { %v190_v13 = vpop.permute.xlu1 %189  ;;  %v182_v14 = vpop.permute.xlu0 %181 }
  0x8b   : > { %v193_v16 = vmul.f32 %v182_v14, %v149_v12  ;;  %v195_v18 = vmul.f32 %v190_v13, %v151_v17 }
  0x8d   : > { %202 = vrot.lane.b32.xlu1 %v193_v16, %s394_s23  ;;  %204 = vrot.lane.b32.xlu0 %v194_v15, %s394_s23 }
  0x8f   : > { %v222_v19 = vpop.permute.xlu1 %221  ;;  %v218_v20 = vpop.permute.xlu0 %217 }
  0x90   : > { %v232_v21 = vmul.f32 %v218_v20, %v148_v7  ;;  %v233_v22 = vmul.f32 %v222_v19, %v149_v12 }
  0x91   : > { %206 = vrot.lane.b32.xlu1 %v195_v18, %s394_s23 }
  0x92   : > { %240 = vrot.lane.b32.xlu0 %v232_v21, %s395_s24 }
  0x93   : > { %v226_v23 = vpop.permute.xlu1 %225  ;;  %v230_v25 = vpop.permute.xlu0 %229 }
  0x94   : > { %v234_v24 = vmul.f32 %v226_v23, %v150_v11  ;;  %v235_v26 = vmul.f32 %v230_v25, %v151_v17 }
  0x95   : > { %242 = vrot.lane.b32.xlu1 %v233_v22, %s395_s24 }
  0x96   : > { %244 = vrot.lane.b32.xlu0 %v234_v24, %s395_s24 }
  0x98   : > { %v155_v27 = vpop.permute.xlu1 %154  ;;  %v160_v29 = vpop.permute.xlu0 %159 }
  0x99   : > { %246 = vrot.lane.b32.xlu1 %v235_v26, %s395_s24  ;;  %v172_v34 = vmul.f32 %v155_v27, %v148_v7  ;;  %v173_v37 = vmul.f32 %v160_v29, %v149_v12 }
  0x9c   : > { %v165_v28 = vpop.permute.xlu1 %164 }
  0x9d   : > { %v174_v39 = vmul.f32 %v165_v28, %v150_v11 }
  0xa0   : > { %v170_v30 = vpop.permute.xlu1 %169 }
  0xa1   : > { %v175_v45 = vmul.f32 %v170_v30, %v151_v17 }
  0xfb   : > { %v201_v31 = vpop.permute.xlu0 %200 }
  0xfc   : > { %v212_v35 = vadd.f32 %v201_v31, %v172_v34 }
  0xff   : > { %v203_v32 = vpop.permute.xlu1 %202  ;;  %v205_v33 = vpop.permute.xlu0 %204 }
 0x100   : > { %v213_v41 = vadd.f32 %v203_v32, %v173_v37  ;;  %v214_v42 = vadd.f32 %v205_v33, %v174_v39 }
 0x103   : > { %v207_v36 = vpop.permute.xlu1 %206 }
 0x104   : > { %v241_v38 = vpop.permute.xlu0 %240  ;;  %v215_v49 = vadd.f32 %v207_v36, %v175_v45 }
 0x105   : > { %v252_v40 = vadd.f32 %v241_v38, %v212_v35 }
 0x107   : > { %v243_v43 = vpop.permute.xlu1 %242  ;;  %v257_v44 = vsel %vm256_vm0, %v252_v40, 0.0  ;;  %v269_v51 = vmul.f32 %v252_v40, %v252_v40 }
 0x108   : > { %v253_v46 = vadd.f32 %v243_v43, %v213_v41  ;;  %v245_v47 = vpop.permute.xlu0 %244  ;;  %258 = vadd.xlane.f32.xlu0 %v257_v44 }
 0x109   : > { %v254_v48 = vadd.f32 %v245_v47, %v214_v42  ;;  %v273_v55 = vsel %vm256_vm0, %v269_v51, 0.0 }
 0x10a   : > { %v260_v50 = vsel %vm256_vm0, %v253_v46, 0.0  ;;  %v270_v58 = vmul.f32 %v253_v46, %v253_v46 }
 0x10b   : > { %v247_v52 = vpop.permute.xlu1 %246  ;;  %261 = vadd.xlane.f32.xlu1 %v260_v50  ;;  %v263_v53 = vsel %vm256_vm0, %v254_v48, 0.0  ;;  %v271_v57 = vmul.f32 %v254_v48, %v254_v48 }
 0x10c   : > { %v255_v54 = vadd.f32 %v247_v52, %v215_v49  ;;  %264 = vadd.xlane.f32.xlu0 %v263_v53  ;;  %v276_v60 = vsel %vm256_vm0, %v270_v58, 0.0 }
 0x10d   : > { %v279_v59 = vsel %vm256_vm0, %v271_v57, 0.0 }
 0x10e   : > { %v266_v56 = vsel %vm256_vm0, %v255_v54, 0.0  ;;  %v272_v61 = vmul.f32 %v255_v54, %v255_v54 }
 0x10f   : > { %274 = vadd.xlane.f32.xlu1 %v273_v55 }
 0x110   : > { %267 = vadd.xlane.f32.xlu0 %v266_v56  ;;  %v282_v62 = vsel %vm256_vm0, %v272_v61, 0.0 }
 0x113   : > { %280 = vadd.xlane.f32.xlu1 %v279_v59 }
 0x114   : > { %277 = vadd.xlane.f32.xlu0 %v276_v60 }
 0x118   : > { %283 = vadd.xlane.f32.xlu0 %v282_v62 }
 0x195   : > { %v259_v63 = vpop.xlane.xlu0 %258 }
 0x198   : > { %v262_v0 = vpop.xlane.xlu1 %261 }
 0x199   : > { %v265_v1 = vpop.xlane.xlu0 %264 }
 0x19c   : > { %v275_v2 = vpop.xlane.xlu1 %274 }
 0x19d   : > { %v286_v3 = vsel %vm285_vm1, %v259_v63, %v275_v2  ;;  %v268_v4 = vpop.xlane.xlu0 %267 }
 0x19e   : > { %291 = vst.msk [vmem:[%s143_s27] sm:$0xff] %vm290_vm2, %v286_v3 }
 0x1a0   : > { %v281_v5 = vpop.xlane.xlu1 %280 }
 0x1a1   : > { %v288_v6 = vsel %vm285_vm1, %v265_v1, %v281_v5  ;;  %v278_v7 = vpop.xlane.xlu0 %277 }
 0x1a2   : > { %293 = vst.msk [vmem:[%s143_s27 + $0x10] sm:$0xff] %vm290_vm2, %v288_v6  ;;  %v287_v8 = vsel %vm285_vm1, %v262_v0, %v278_v7 }
 0x1a3   : > { %292 = vst.msk [vmem:[%s143_s27 + $0x8] sm:$0xff] %vm290_vm2, %v287_v8 }
 0x1a5   : > { %v284_v9 = vpop.xlane.xlu0 %283 }
 0x1a6   : > { %v289_v10 = vsel %vm285_vm1, %v268_v4, %v284_v9 }
 0x1a7   : > { %294 = vst.msk [vmem:[%s143_s27 + $0x18] sm:$0xff] %vm290_vm2, %v289_v10 }
 0x1a8 PF: > { %s12_s9 = sadd.s32 1, %s389_s9  }
 0x1a9   : > { %p9_p4 = scmp.ge.s32.totalorder %s12_s9, 4  }
 0x1ab   :  { %11 = sbr.rel (!%p9_p4) target bundleno = 1 (0x1), region = 58 }

// kernel: depsep_block.4
= control target key start
LH: loop header
LB: loop body
LE: loop exit
PB: predicated region body
PF: predicated region fallthrough
CT: control target
= control target key end

     0   :  { %s860_s18 = smov 0   ;;  %s923_s0 = inlined_call_operand.vmem [shape: f32[2,32,16], index: 0, kind: input, shape index: {}]   ;;  %s924_s1 = inlined_call_operand.vmem [shape: f32[32,5], index: 1, kind: input, shape index: {}]   ;;  %s925_s2 = inlined_call_operand.vmem [shape: f32[8,33], index: 2, kind: input, shape index: {}]   ;;  %s926_s3 = inlined_call_operand.vmem [shape: f32[16,9], index: 3, kind: input, shape index: {}]   ;;  %s927_s4 = inlined_call_operand.vmem [shape: f32[2,8,14], index: 4, kind: output, shape index: {0}]   ;;  %s928_s5 = inlined_call_operand.vmem [shape: f32[2,16,2], index: 5, kind: output, shape index: {1}]  }
   0x1 LB: > { %s702_s19 = sadd.s32 4294967295, %s816_s18   ;;  %p706_p0 = scmp.ge.s32.totalorder %s816_s18, 1  ;;  %s816_s18 = sphi %s860_s18, %s16_s18  }
   0x2   : > { %p190_p1 = scmp.lt.s32.totalorder %s816_s18, 3 }
   0x4   : > { %p191_p2 = pnand %p706_p0, %p190_p1 }
   0x5   : > { %v236_v0 = vld [vmem:[%s924_s1] sm:$0xff] (!%p191_p2)  ;;  %v818_v1 = vmov (!%p191_p2), 1   ;;  %v819_v2 = vmov (!%p191_p2), 2   ;;  %v237_v3 = vld [vmem:[%s924_s1 + $0x8] sm:$0xff] (!%p191_p2)  ;;  %v238_v4 = vld [vmem:[%s924_s1 + $0x10] sm:$0xff] (!%p191_p2)  ;;  %v820_v6 = vmov (!%p191_p2), 0  }
   0x6   : > { %194 = sbr.rel (%p191_p2) target bundleno = 923 (0x39b), region = 36  ;;  %774 = vset.pattern.permute.xlu0 (!%p191_p2), %v818_v1  ;;  %775 = vset.pattern.permute.xlu1 (!%p191_p2), %v819_v2  ;;  %v239_v5 = vld [vmem:[%s924_s1 + $0x18] sm:$0xff] (!%p191_p2)  ;;  %v821_v7 = vmov (!%p191_p2), 3   ;;  %v822_v8 = vmov (!%p191_p2), 4   ;;  %p222_p3 = scmp.lt.s32.totalorder (!%p191_p2), %s702_s19, 1  ;;  %v825_v29 = vmov (!%p191_p2), 0.0|0.0  }
   0x7   : > { %269 = vperm.xlu0 (!%p191_p2), %774, %v236_v0   ;;  %309 = vperm.xlu1 (!%p191_p2), %775, %v236_v0   ;;  %s823_s7 = smov (!%p191_p2), 127   ;;  %s824_s8 = smov (!%p191_p2), 126   ;;  %vm826_vm0 = vmmov (!%p191_p2), 0   ;;  %v827_v30 = vmov (!%p191_p2), 0.0   ;;  %v894_v31 = vld [vmem:[%s925_s2] sm:$0xff] (!%p191_p2)  ;;  %v828_v32 = vmov (!%p191_p2), 32  }
   0x8   : > { %748 = vmatprep.subr.bf16.mxu0 (!%p191_p2), %v825_v29  ;;  %740 = vmatprep.mubr.msk.f32.mxu0 (!%p191_p2), %vm826_vm0, %v827_v30  ;;  %vm422_vm1 = vcmask (!%p191_p2), 261120   ;;  %vm516_vm2 = vcmask (!%p191_p2), 64512   ;;  %vm502_vm3 = vcmask (!%p191_p2), 113664   ;;  %vm610_vm4 = vcmask (!%p191_p2), 7168  }
   0x9   : > { %vm613_vm5 = vcmask (!%p191_p2), 15360  }
   0xb   : > { %273 = vperm.xlu0 (!%p191_p2), %774, %v237_v3   ;;  %313 = vperm.xlu1 (!%p191_p2), %775, %v237_v3  }
   0xd   : > { %s930_s19 = smov (!%p222_p3, %s702_s19), 1 }
   0xe   : > { %s722_s28 = sshll.u32 %s930_s19, 5  ;;  %s709_s15 = sshll.u32 %s930_s19, 3 }
   0xf   : > { %277 = vperm.xlu0 %774, %v238_v4   ;;  %776 = vset.pattern.permute.xlu1 %v818_v1  ;;  %s226_s6 = scalar_lea.vmem %s923_s0, %s722_s28  ;;  %s230_s20 = scalar_lea.vmem %s927_s4, %s709_s15 }
  0x10   : > { %281 = vperm.xlu1 %776, %v239_v5   ;;  %v240_v9 = vld [vmem:[%s226_s6] sm:$0xff]  ;;  %v241_v13 = vld [vmem:[%s226_s6 + $0x8] sm:$0xff]  ;;  %v242_v20 = vld [vmem:[%s226_s6 + $0x10] sm:$0xff]  ;;  %s723_s21 = sshll.u32 %s930_s19, 4 }
  0x11   : > { %v243_v22 = vld [vmem:[%s226_s6 + $0x18] sm:$0xff]  ;;  %s235_s24 = scalar_lea.vmem %s928_s5, %s723_s21 }
  0x13   : > { %777 = vset.pattern.permute.xlu0 %v819_v2 }
  0x14   : > { %317 = vperm.xlu0 %777, %v238_v4   ;;  %778 = vset.pattern.permute.xlu1 %v819_v2 }
  0x15   : > { %321 = vperm.xlu1 %778, %v239_v5  }
  0x18   : > { %780 = vset.pattern.permute.xlu0 %v820_v6 }
  0x19   : > { %779 = vset.pattern.permute.xlu1 %v820_v6  ;;  %251 = vperm.xlu0 %780, %v237_v3  }
  0x1a   : > { %246 = vperm.xlu1 %779, %v236_v0  }
  0x1d   : > { %781 = vset.pattern.permute.xlu0 %v821_v7 }
  0x1e   : > { %256 = vperm.xlu1 %779, %v238_v4   ;;  %349 = vperm.xlu0 %781, %v236_v0  }
  0x22   : > { %261 = vperm.xlu1 %779, %v239_v5   ;;  %357 = vperm.xlu0 %781, %v238_v4  }
  0x26   : > { %782 = vset.pattern.permute.xlu1 %v821_v7  ;;  %784 = vset.pattern.permute.xlu0 %v822_v8 }
  0x27   : > { %353 = vperm.xlu1 %782, %v237_v3   ;;  %373 = vperm.xlu0 %784, %v237_v3  }
  0x2b   : > { %783 = vset.pattern.permute.xlu1 %v822_v8  ;;  %381 = vperm.xlu0 %784, %v239_v5  }
  0x2c   : > { %369 = vperm.xlu1 %783, %v236_v0  }
  0x2f   : > { %787 = vset.pattern.permute.xlu0 %v828_v32 }
  0x30   : > { %785 = vset.pattern.permute.xlu1 %v821_v7 }
  0x31   : > { %361 = vperm.xlu1 %785, %v239_v5  }
  0x35   : > { %786 = vset.pattern.permute.xlu1 %v822_v8 }
  0x36   : > { %377 = vperm.xlu1 %786, %v238_v4  }
  0x86   : > { %v270_v10 = vpop.permute.xlu0 %269  ;;  %v310_v11 = vpop.permute.xlu1 %309 }
  0x87   : > { %v284_v12 = vmul.f32 %v270_v10, %v240_v9  ;;  %v324_v18 = vmul.f32 %v310_v11, %v240_v9 }
  0x89   : > { %292 = vrot.lane.b32.xlu1 %v284_v12, %s823_s7 }
  0x8a   : > { %v274_v14 = vpop.permute.xlu0 %273  ;;  %v314_v15 = vpop.permute.xlu1 %313 }
  0x8b   : > { %v285_v16 = vmul.f32 %v274_v14, %v241_v13  ;;  %v325_v17 = vmul.f32 %v314_v15, %v241_v13 }
  0x8d   : > { %294 = vrot.lane.b32.xlu1 %v285_v16, %s823_s7  ;;  %334 = vrot.lane.b32.xlu0 %v325_v17, %s824_s8 }
  0x8e   : > { %v278_v19 = vpop.permute.xlu0 %277 }
  0x8f   : > { %v282_v21 = vpop.permute.xlu1 %281  ;;  %v286_v23 = vmul.f32 %v278_v19, %v242_v20 }
  0x90   : > { %v287_v26 = vmul.f32 %v282_v21, %v243_v22 }
  0x91   : > { %332 = vrot.lane.b32.xlu1 %v324_v18, %s824_s8 }
  0x93   : > { %v318_v24 = vpop.permute.xlu0 %317 }
  0x94   : > { %v326_v25 = vmul.f32 %v318_v24, %v242_v20  ;;  %v322_v27 = vpop.permute.xlu1 %321 }
  0x95   : > { %296 = vrot.lane.b32.xlu1 %v286_v23, %s823_s7  ;;  %v327_v28 = vmul.f32 %v322_v27, %v243_v22 }
  0x96   : > { %336 = vrot.lane.b32.xlu0 %v326_v25, %s824_s8 }
  0x98   : > { %v252_v36 = vpop.permute.xlu0 %251 }
  0x99   : > { %298 = vrot.lane.b32.xlu1 %v287_v26, %s823_s7  ;;  %v247_v33 = vpop.permute.xlu1 %246  ;;  %v265_v46 = vmul.f32 %v252_v36, %v241_v13 }
  0x9a   : > { %419 = vperm.xlu0 %787, %v894_v31   ;;  %v264_v49 = vmul.f32 %v247_v33, %v240_v9  ;;  %v504_v33 = vld [vmem:[%s926_s3] sm:$0xff] }
  0x9b   : > { %745 = vmatprep.mubr.msk.f32.mxu1 %vm516_vm2, %v504_v33 }
  0x9d   : > { %338 = vrot.lane.b32.xlu1 %v327_v28, %s824_s8  ;;  %v257_v34 = vpop.permute.xlu1 %256  ;;  %v350_v38 = vpop.permute.xlu0 %349 }
  0x9e   : > { %v266_v56 = vmul.f32 %v257_v34, %v242_v20  ;;  %v829_v34 = vmov 8  }
  0x9f   : > { %788 = vset.pattern.permute.xlu1 %v829_v34  ;;  %789 = vset.pattern.permute.xlu0 %v829_v34 }
  0xa1   : > { %v262_v35 = vpop.permute.xlu1 %261  ;;  %v358_v40 = vpop.permute.xlu0 %357  ;;  %508 = vperm.xlu1 %788, %v504_v33  }
  0xa2   : > { %v267_v3 = vmul.f32 %v262_v35, %v243_v22 }
  0xa6   : > { %v354_v37 = vpop.permute.xlu1 %353  ;;  %v374_v42 = vpop.permute.xlu0 %373 }
  0xaa   : > { %v382_v44 = vpop.permute.xlu0 %381 }
  0xab   : > { %v370_v39 = vpop.permute.xlu1 %369 }
  0xb0   : > { %v362_v41 = vpop.permute.xlu1 %361 }
  0xb5   : > { %v378_v43 = vpop.permute.xlu1 %377 }
  0xfb   : > { %v293_v45 = vpop.permute.xlu1 %292 }
  0xfc   : > { %v304_v51 = vadd.f32 %v293_v45, %v264_v49 }
  0xff   : > { %v295_v47 = vpop.permute.xlu1 %294  ;;  %v335_v48 = vpop.permute.xlu0 %334 }
 0x100   : > { %v305_v50 = vadd.f32 %v295_v47, %v265_v46 }
 0x102   : > { %v345_v52 = vadd.f32 %v335_v48, %v305_v50 }
 0x103   : > { %v333_v53 = vpop.permute.xlu1 %332 }
 0x104   : > { %v365_v54 = vmul.f32 %v354_v37, %v345_v52  ;;  %v344_v55 = vadd.f32 %v333_v53, %v304_v51 }
 0x106   : > { %v385_v57 = vadd.f32 %v374_v42, %v365_v54  ;;  %v364_v58 = vmul.f32 %v350_v38, %v344_v55 }
 0x107   : > { %v297_v59 = vpop.permute.xlu1 %296 }
 0x108   : > { %v713_v60 = vmul.f32 -1.442695, %v385_v57  ;;  %v384_v61 = vadd.f32 %v370_v39, %v364_v58  ;;  %v306_v62 = vadd.f32 %v297_v59, %v266_v56  ;;  %v337_v63 = vpop.permute.xlu0 %336 }
 0x10a   : > { %790 = vpow2.f32 %v713_v60  ;;  %v712_v0 = vmul.f32 -1.442695, %v384_v61  ;;  %v346_v1 = vadd.f32 %v337_v63, %v306_v62 }
 0x10b   : > { %v299_v2 = vpop.permute.xlu1 %298 }
 0x10c   : > { %792 = vpow2.f32 %v712_v0  ;;  %v366_v4 = vmul.f32 %v358_v40, %v346_v1  ;;  %v307_v6 = vadd.f32 %v299_v2, %v267_v3 }
 0x10e   : > { %v386_v5 = vadd.f32 %v378_v43, %v366_v4 }
 0x10f   : > { %v339_v7 = vpop.permute.xlu1 %338 }
 0x110   : > { %v714_v8 = vmul.f32 -1.442695, %v386_v5  ;;  %v347_v9 = vadd.f32 %v339_v7, %v307_v6 }
 0x112   : > { %794 = vpow2.f32 %v714_v8  ;;  %v367_v10 = vmul.f32 %v362_v41, %v347_v9 }
 0x114   : > { %v791_v11 = vpop.eup %790  ;;  %v387_v12 = vadd.f32 %v382_v44, %v367_v10 }
 0x115   : > { %v401_v13 = vadd.f32 1.0, %v791_v11 }
 0x116   : > { %v793_v14 = vpop.eup %792  ;;  %v715_v15 = vmul.f32 -1.442695, %v387_v12 }
 0x117   : > { %796 = vrcp.f32 %v401_v13  ;;  %v400_v16 = vadd.f32 1.0, %v793_v14 }
 0x118   : > { %798 = vpow2.f32 %v715_v15 }
 0x119   : > { %800 = vrcp.f32 %v400_v16  ;;  %v420_v35 = vpop.permute.xlu0 %419 }
 0x11c   : > { %v795_v17 = vpop.eup %794 }
 0x11d   : > { %v402_v18 = vadd.f32 1.0, %v795_v17 }
 0x11f   : > { %802 = vrcp.f32 %v402_v18 }
 0x120   : > { %v509_v43 = vpop.permute.xlu1 %508 }
 0x121   : > { %v797_v19 = vpop.eup %796 }
 0x122   : > { %v799_v20 = vpop.eup %798  ;;  %v413_v24 = vmul.f32 %v797_v19, %v385_v57 }
 0x123   : > { %v801_v21 = vpop.eup %800  ;;  %v403_v22 = vadd.f32 1.0, %v799_v20 }
 0x124   : > { %v412_v23 = vmul.f32 %v801_v21, %v384_v61 }
 0x125   : > { %804 = vrcp.f32 %v403_v22 }
 0x126   : > { %v749_v25 = vpack.c.bf16 %v413_v24, %v412_v23 }
 0x128   : > { %750 = vmatpush3.bf16.msra.mxu0 %v749_v25 }
 0x129   : > { %751 = vmatprep.subr.bf16.mxu0 %v825_v29  ;;  %v803_v26 = vpop.eup %802  ;;  %v505_v29 = vld [vmem:[%s926_s3 + $0x8] sm:$0xff] }
 0x12a   : > { %v414_v28 = vmul.f32 %v803_v26, %v386_v5  ;;  %513 = vperm.xlu1 %788, %v505_v29  }
 0x12f   : > { %v805_v27 = vpop.eup %804 }
 0x130   : > { %v415_v30 = vmul.f32 %v805_v27, %v387_v12 }
 0x132   : > { %v752_v32 = vpack.c.bf16 %v415_v30, %v414_v28 }
 0x134   : > { %753 = vmatpush3.bf16.msra.mxu0 %v752_v32 }
 0x137   : > { %741 = vmatmul.mubr.msk.f32.vlgmr.msra.gmra.mrb[0].mxu0 %vm422_vm1, %v894_v31 }
 0x1a9   : > { %v514_v44 = vpop.permute.xlu1 %513 }
 0x20a   : > { %v491_v36 = vpop.f32.mrb[0].mxu0 }
 0x20b   : > { %v492_v31 = vadd.f32 %v491_v36, %v420_v35  ;;  %v742_v37 = vpop.f32.mrb[1].mxu0 }
 0x20d   : > { %v717_v38 = vmul.f32 -1.442695, %v492_v31 }
 0x20f   : > { %806 = vpow2.f32 %v717_v38 }
 0x219   : > { %v807_v39 = vpop.eup %806 }
 0x21a   : > { %v498_v40 = vadd.f32 1.0, %v807_v39 }
 0x21c   : > { %808 = vrcp.f32 %v498_v40 }
 0x226   : > { %v809_v41 = vpop.eup %808 }
 0x227   : > { %v501_v42 = vmul.f32 %v809_v41, %v492_v31 }
 0x229   : > { %743 = vmatprep.subr.mxu1 %v501_v42  ;;  %503 = vst.msk [vmem:[%s230_s20] sm:$0xff] %vm502_vm3, %v501_v42 }
 0x22a   : > { %744 = vmatpush3.msra.mxu1 %v501_v42 }
 0x22b   : > { %746 = vmatmul.mubr.msk.f32.vlgmr.msra.gmra.mrb[0].mxu1 %vm516_vm2, %v505_v29 }
 0x2fe   : > { %v747_v45 = vpop.f32.mrb[0].mxu1 }
 0x2ff   : > { %v593_v46 = vadd.f32 %v747_v45, %v514_v44  ;;  %v587_v47 = vpop.f32.mrb[1].mxu1 }
 0x300   : > { %v588_v48 = vadd.f32 %v587_v47, %v509_v43 }
 0x301   : > { %v599_v49 = vsel %vm502_vm3, %v593_v46, 0.0  ;;  %v603_v53 = vmul.f32 %v593_v46, %v593_v46 }
 0x302   : > { %600 = vadd.xlane.f32.xlu1 %v599_v49  ;;  %v596_v50 = vsel %vm502_vm3, %v588_v48, 0.0  ;;  %v602_v51 = vmul.f32 %v588_v48, %v588_v48 }
 0x303   : > { %597 = vadd.xlane.f32.xlu0 %v596_v50  ;;  %v607_v54 = vsel %vm502_vm3, %v603_v53, 0.0 }
 0x304   : > { %v604_v52 = vsel %vm502_vm3, %v602_v51, 0.0 }
 0x307   : > { %605 = vadd.xlane.f32.xlu0 %v604_v52 }
 0x30b   : > { %608 = vadd.xlane.f32.xlu0 %v607_v54 }
 0x38f   : > { %v601_v58 = vpop.xlane.xlu1 %600 }
 0x390   : > { %v598_v55 = vpop.xlane.xlu0 %597 }
 0x394   : > { %v606_v56 = vpop.xlane.xlu0 %605 }
 0x395   : > { %v611_v57 = vsel %vm610_vm4, %v598_v55, %v606_v56 }
 0x396   : > { %614 = vst.msk [vmem:[%s235_s24] sm:$0xff] %vm613_vm5, %v611_v57 }
 0x398   : > { %v609_v59 = vpop.xlane.xlu0 %608 }
 0x399   : > { %v612_v60 = vsel %vm610_vm4, %v601_v58, %v609_v59 }
 0x39a   : > { %615 = vst.msk [vmem:[%s235_s24 + $0x8] sm:$0xff] %vm613_vm5, %v612_v60 }
 0x39b PF: > { %s16_s18 = sadd.s32 1, %s816_s18  }
 0x39c   : > { %p13_p4 = scmp.ge.s32.totalorder %s16_s18, 4  }
 0x39e   :  { %15 = sbr.rel (!%p13_p4) target bundleno = 1 (0x1), region = 78 }

</bundles_post_ra>
